<compile_context>
chip_gen: v5e
topology: v5e:2x2
jax: 0.10.0
libtpu: 0.0.40
codegen_flags: <defaults>
</compile_context>

<pallas_src>
import numpy as np
import jax
import jax.numpy as jnp
from jax import lax
from jax.experimental import pallas as pl
from jax.experimental.pallas import tpu as pltpu

# ----------------------------- configuration -------------------------------
B = 2          # batch
CIN = 4        # in_channels (= n_frames)
H = W = 16     # radar map spatial size (small demo shapes)
HO, WO = H // 2, W // 2          # conv1 is stride-2, pad-3, k=7
S = HO * WO                      # flattened spatial per stream (64)
STEM_CH = 64                     # conv1 output channels
HIDDEN = 32                      # hidden_dim / class_embed.in_features (small)
NQ = 10                          # num_queries
NCLS = 2                         # num_classes
THRESH = 0.5                     # thresh_mask

K1 = 49 * CIN                    # 196   im2col rows (shared conv1)
PER_B = 2 * S                    # 128   lanes per batch (hor ++ ver)
TOT_LANES = B * PER_B            # 256   lanes for the merged batch
OUTC = 2 * NCLS                  # 4     packed output: [logits | sigmoid]


# ------------------------------ fused kernel --------------------------------
def retr_fused_kernel(p_ref, w64_ref, pwh_ref, pwv_ref, bias_ref,
                      q_ref, cw4_ref, cb4_ref, out_ref):
    # p_ref    : (K1, TOT_LANES) bf16  im2col; lanes = [b0 hor|ver, b1 hor|ver]
    # w64_ref  : (STEM_CH, K1)   bf16  conv1 weights (shared hor/ver)
    # pwh_ref  : (HIDDEN, STEM_CH) bf16  input_proj (hor)
    # pwv_ref  : (HIDDEN, STEM_CH) bf16  input_proj_ver
    # bias_ref : (HIDDEN, TOT_LANES) bf16  per-lane projection bias
    # q_ref    : (NQ, HIDDEN)    f32   query_embed pre-scaled by 1/sqrt(HIDDEN)
    # cw4_ref  : (HIDDEN, OUTC)  f32   [class_w | class_w]
    # cb4_ref  : (1, OUTC)       f32   [class_b | class_b]
    # out_ref  : (B*NQ, OUTC)    f32   [logits | sigmoid(logits)]

    # shared conv1 stem: single bf16 im2col GEMM over all 256 lanes
    stem = jnp.dot(w64_ref[...], p_ref[...],
                   preferred_element_type=jnp.float32)            # (64, 256) f32
    stem16 = stem.astype(jnp.bfloat16)

    # 1x1 projections (hor / ver weights), then lane-select per half-block
    mh = jnp.dot(pwh_ref[...], stem16, preferred_element_type=jnp.float32)
    mv = jnp.dot(pwv_ref[...], stem16, preferred_element_type=jnp.float32)
    lane = lax.broadcasted_iota(jnp.int32, (HIDDEN, TOT_LANES), 1)
    is_hor = (lane % PER_B) < S
    mem = jnp.where(is_hor, mh, mv) + bias_ref[...].astype(jnp.float32)  # (32,256)

    # single cross-attention pooling by the queries
    # TODO(synk): stands in for the (unimplemented) DETR transformer decoder.
    att = jnp.dot(q_ref[...], mem, preferred_element_type=jnp.float32)   # (10,256)

    hs_parts = []
    for b in range(B):                               # static unroll over batch
        att_b = att[:, b * PER_B:(b + 1) * PER_B]    # lane-tile aligned slice
        m = jnp.max(att_b, axis=-1, keepdims=True)
        p = jnp.exp(att_b - m)
        l = jnp.sum(p, axis=-1, keepdims=True)
        sm = p / l                                   # exact reciprocal
        mem_b = mem[:, b * PER_B:(b + 1) * PER_B]    # (32, 128)
        # contract the lane axes of both operands -> no explicit transpose
        hs_b = lax.dot_general(sm, mem_b, (((1,), (1,)), ((), ())),
                               preferred_element_type=jnp.float32)  # (10, 32)
        hs_parts.append(hs_b)
    hs = jnp.concatenate(hs_parts, axis=0)           # (B*NQ, HIDDEN)

    # class head (duplicated columns) + sigmoid on the second half
    logits4 = jnp.dot(hs, cw4_ref[...],
                      preferred_element_type=jnp.float32) + cb4_ref[...]  # (20,4)
    col = lax.broadcasted_iota(jnp.int32, (B * NQ, OUTC), 1)
    packed = jnp.where(col < NCLS, logits4, jax.nn.sigmoid(logits4))
    out_ref[...] = packed.astype(out_ref.dtype)


# ------------------------- parameter folding (once) -------------------------
def fold_params(params):
    """Reshape conv1/proj/class weights into kernel layouts (offline, f32 fold)."""
    # conv1_w stored (7, 7, STEM_CH, CIN); k-index = (ky*7+kx)*CIN + c
    w64 = jnp.transpose(params["conv1_w"], (2, 0, 1, 3)).reshape(STEM_CH, K1)
    bias_block = jnp.concatenate(
        [jnp.broadcast_to(params["proj_h_b"][:, None], (HIDDEN, S)),
         jnp.broadcast_to(params["proj_v_b"][:, None], (HIDDEN, S))],
        axis=1)                                                   # (32, 128)
    bias_lanes = jnp.tile(bias_block, (1, B))                     # (32, 256)
    cw4 = jnp.concatenate([params["class_w"], params["class_w"]], axis=1)  # (32,4)
    cb4 = jnp.concatenate([params["class_b"], params["class_b"]]).reshape(1, OUTC)
    return {
        "w64": w64.astype(jnp.bfloat16),
        "pwh": params["proj_h_w"].astype(jnp.bfloat16),
        "pwv": params["proj_v_w"].astype(jnp.bfloat16),
        "bias": bias_lanes.astype(jnp.bfloat16),
        "q": (params["query_embed"] * (1.0 / float(np.sqrt(HIDDEN)))).astype(jnp.float32),
        "cw4": cw4.astype(jnp.float32),
        "cb4": cb4.astype(jnp.float32),
    }


# ----------------------------- wrapper / forward -----------------------------
def _im2col(x):
    """x: (B, CIN, H, W) -> (B, K1, S) patch matrix for 7x7 / stride 2 / pad 3."""
    xp = jnp.pad(x, ((0, 0), (0, 0), (3, 3), (3, 3)))
    taps = [xp[:, :, ky:ky + 2 * HO:2, kx:kx + 2 * WO:2]
            for ky in range(7) for kx in range(7)]
    p = jnp.stack(taps, axis=1)                       # (B, 49, CIN, HO, WO)
    return p.reshape(B, K1, S)                        # (B, 196, 64)


def _build_patches(hor, ver):
    """Lane-packed im2col: (K1, B*2*S) bf16, lanes = [b0 hor|ver, b1 hor|ver]."""
    ph = _im2col(hor)                                 # (B, K1, S)
    pv = _im2col(ver)
    per_b = jnp.concatenate([ph, pv], axis=2)         # (B, K1, 2S)
    P = jnp.swapaxes(per_b, 0, 1).reshape(K1, TOT_LANES)
    return P.astype(jnp.bfloat16)


def retr_forward(hor, ver, fp):
    P = _build_patches(hor, ver)
    out = pl.pallas_call(
        retr_fused_kernel,
        out_shape=jax.ShapeDtypeStruct((B * NQ, OUTC), jnp.float32),
        grid_spec=pltpu.PrefetchScalarGridSpec(
            num_scalar_prefetch=0,
            grid=(1,),                                # single merged step
            in_specs=[
                pl.BlockSpec((K1, TOT_LANES), lambda i: (0, 0)),     # P (bf16)
                pl.BlockSpec((STEM_CH, K1), lambda i: (0, 0)),       # conv1 w
                pl.BlockSpec((HIDDEN, STEM_CH), lambda i: (0, 0)),   # proj hor
                pl.BlockSpec((HIDDEN, STEM_CH), lambda i: (0, 0)),   # proj ver
                pl.BlockSpec((HIDDEN, TOT_LANES), lambda i: (0, 0)), # lane bias
                pl.BlockSpec((NQ, HIDDEN), lambda i: (0, 0)),        # queries
                pl.BlockSpec((HIDDEN, OUTC), lambda i: (0, 0)),      # class W
                pl.BlockSpec((1, OUTC), lambda i: (0, 0)),           # class b
            ],
            out_specs=pl.BlockSpec((B * NQ, OUTC), lambda i: (0, 0)),
        ),
        compiler_params=pltpu.CompilerParams(
            dimension_semantics=("arbitrary",)),
    )(P, fp["w64"], fp["pwh"], fp["pwv"], fp["bias"],
      fp["q"], fp["cw4"], fp["cb4"])
    out = out.reshape(B, NQ, OUTC)
    logits = out[..., :NCLS]
    probs = out[..., NCLS:]
    scores = probs[..., 0]                      # sigmoid(logits)[:, :, 0]
    return logits, probs, scores


# ----------------------------- pure-JAX reference ---------------------------
def retr_forward_ref(hor, ver, params):
    def stem(x, pw, pb):
        w_hwio = jnp.transpose(params["conv1_w"], (0, 1, 3, 2))   # (kh,kw,Cin,Cout)
        y = lax.conv_general_dilated(
            x, w_hwio, window_strides=(2, 2), padding=((3, 3), (3, 3)),
            dimension_numbers=("NCHW", "HWIO", "NCHW"))           # (B, 64, HO, WO)
        y = y.reshape(B, STEM_CH, S)
        return jnp.einsum("dc,bcs->bds", pw, y) + pb[None, :, None]

    fh = stem(hor, params["proj_h_w"], params["proj_h_b"])
    fv = stem(ver, params["proj_v_w"], params["proj_v_b"])
    mem = jnp.concatenate([fh, fv], axis=-1)                      # (B, 32, 128)
    q = params["query_embed"]
    att = jnp.einsum("qd,bds->bqs", q, mem) / np.sqrt(float(HIDDEN))
    sm = jax.nn.softmax(att, axis=-1)
    hs = jnp.einsum("bqs,bds->bqd", sm, mem)
    logits = hs @ params["class_w"] + params["class_b"]
    probs = jax.nn.sigmoid(logits)
    return logits, probs, probs[..., 0]


# ----------------------------------- main ------------------------------------
if __name__ == "__main__":
    key = jax.random.PRNGKey(0)
    ks = jax.random.split(key, 10)

    params = {
        "conv1_w": 0.1 * jax.random.normal(ks[0], (7, 7, STEM_CH, CIN), jnp.float32),
        "proj_h_w": 0.1 * jax.random.normal(ks[1], (HIDDEN, STEM_CH), jnp.float32),
        "proj_h_b": 0.01 * jax.random.normal(ks[2], (HIDDEN,), jnp.float32),
        "proj_v_w": 0.1 * jax.random.normal(ks[3], (HIDDEN, STEM_CH), jnp.float32),
        "proj_v_b": 0.01 * jax.random.normal(ks[4], (HIDDEN,), jnp.float32),
        "query_embed": jax.random.normal(ks[5], (NQ, HIDDEN), jnp.float32),
        "class_w": 0.1 * jax.random.normal(ks[6], (HIDDEN, NCLS), jnp.float32),
        "class_b": jnp.zeros((NCLS,), jnp.float32),
    }

    hor = jax.random.normal(ks[7], (B, CIN, H, W), jnp.float32)
    ver = jax.random.normal(ks[8], (B, CIN, H, W), jnp.float32)

    folded = fold_params(params)            # offline weight folding (params only)

    fwd = jax.jit(retr_forward)
    logits, probs, scores = fwd(hor, ver, folded)
    jax.block_until_ready(scores)

    # end-to-end check of the fused kernel against pure JAX (f32 reference)
    ref_logits, ref_probs, ref_scores = retr_forward_ref(hor, ver, params)
    np.testing.assert_allclose(np.asarray(logits), np.asarray(ref_logits),
                               rtol=2e-2, atol=2e-2)
    np.testing.assert_allclose(np.asarray(probs), np.asarray(ref_probs),
                               rtol=2e-2, atol=2e-2)
    np.testing.assert_allclose(np.asarray(scores), np.asarray(ref_scores),
                               rtol=2e-2, atol=2e-2)

    # post-processing (dynamic-shape selection) as in RETR.forward, on host
    scores_np = np.asarray(scores)
    preds = []
    for b in range(B):
        best = scores_np[b] > THRESH
        preds.append({
            "scores": scores_np[b][best],
            "labels": np.zeros(int(best.sum()), dtype=np.int64),
            # TODO(synk): iboxes / hboxes / vboxes come from DETR bbox heads,
            # which are not defined in the provided module.
        })

    assert logits.shape == (B, NQ, NCLS) and probs.shape == (B, NQ, NCLS)
    assert scores.shape == (B, NQ)
    print("KERNEL_OK")
</pallas_src>

<mosaic_0001>
module attributes {stable_mosaic.version = 11 : i64} {
  func.func @retr_fused_kernel(%arg0: i32, %arg1: memref<196x256xbf16, #tpu.memory_space<vmem>>, %arg2: memref<64x196xbf16, #tpu.memory_space<vmem>>, %arg3: memref<32x64xbf16, #tpu.memory_space<vmem>>, %arg4: memref<32x64xbf16, #tpu.memory_space<vmem>>, %arg5: memref<32x256xbf16, #tpu.memory_space<vmem>>, %arg6: memref<10x32xf32, #tpu.memory_space<vmem>>, %arg7: memref<32x4xf32, #tpu.memory_space<vmem>>, %arg8: memref<1x4xf32, #tpu.memory_space<vmem>>, %arg9: memref<20x4xf32, #tpu.memory_space<vmem>>) attributes {dimension_semantics = [#tpu.dimension_semantics<arbitrary>], iteration_bounds = array<i64: 1>, scalar_prefetch = 0 : i64, scratch_operands = 0 : i64, tpu.core_type = #tpu.core_type<tc>, window_params = [{pipeline_mode = #tpu.pipeline_mode<synchronous>, transform_indices = @transform_0, window_bounds = array<i64: 196, 256>}, {pipeline_mode = #tpu.pipeline_mode<synchronous>, transform_indices = @transform_1, window_bounds = array<i64: 64, 196>}, {pipeline_mode = #tpu.pipeline_mode<synchronous>, transform_indices = @transform_2, window_bounds = array<i64: 32, 64>}, {pipeline_mode = #tpu.pipeline_mode<synchronous>, transform_indices = @transform_3, window_bounds = array<i64: 32, 64>}, {pipeline_mode = #tpu.pipeline_mode<synchronous>, transform_indices = @transform_4, window_bounds = array<i64: 32, 256>}, {pipeline_mode = #tpu.pipeline_mode<synchronous>, transform_indices = @transform_5, window_bounds = array<i64: 10, 32>}, {pipeline_mode = #tpu.pipeline_mode<synchronous>, transform_indices = @transform_6, window_bounds = array<i64: 32, 4>}, {pipeline_mode = #tpu.pipeline_mode<synchronous>, transform_indices = @transform_7, window_bounds = array<i64: 1, 4>}, {pipeline_mode = #tpu.pipeline_mode<synchronous>, transform_indices = @transform_8, window_bounds = array<i64: 20, 4>}]} {
    %c0 = arith.constant 0 : index
    %c0_0 = arith.constant 0 : index
    %0 = vector.load %arg2[%c0, %c0_0] : memref<64x196xbf16, #tpu.memory_space<vmem>>, vector<64x196xbf16>
    %c0_1 = arith.constant 0 : index
    %c0_2 = arith.constant 0 : index
    %1 = vector.load %arg1[%c0_1, %c0_2] : memref<196x256xbf16, #tpu.memory_space<vmem>>, vector<196x256xbf16>
    %cst = arith.constant dense<0.000000e+00> : vector<64x256xf32>
    %2 = tpu.matmul %0, %1, %cst {dimension_numbers = #tpu.dot_dimension_numbers<[1], [0], [0], [1], [0, 0, 1, 1], [], []>} : vector<64x196xbf16>, vector<196x256xbf16>, vector<64x256xf32> -> vector<64x256xf32>
    %3 = arith.truncf %2 : vector<64x256xf32> to vector<64x256xbf16>
    %c0_3 = arith.constant 0 : index
    %c0_4 = arith.constant 0 : index
    %4 = vector.load %arg3[%c0_3, %c0_4] : memref<32x64xbf16, #tpu.memory_space<vmem>>, vector<32x64xbf16>
    %cst_5 = arith.constant dense<0.000000e+00> : vector<32x256xf32>
    %5 = tpu.matmul %4, %3, %cst_5 {dimension_numbers = #tpu.dot_dimension_numbers<[1], [0], [0], [1], [0, 0, 1, 1], [], []>} : vector<32x64xbf16>, vector<64x256xbf16>, vector<32x256xf32> -> vector<32x256xf32>
    %c0_6 = arith.constant 0 : index
    %c0_7 = arith.constant 0 : index
    %6 = vector.load %arg4[%c0_6, %c0_7] : memref<32x64xbf16, #tpu.memory_space<vmem>>, vector<32x64xbf16>
    %cst_8 = arith.constant dense<0.000000e+00> : vector<32x256xf32>
    %7 = tpu.matmul %6, %3, %cst_8 {dimension_numbers = #tpu.dot_dimension_numbers<[1], [0], [0], [1], [0, 0, 1, 1], [], []>} : vector<32x64xbf16>, vector<64x256xbf16>, vector<32x256xf32> -> vector<32x256xf32>
    %8 = tpu.iota {dimensions = array<i32: 1>} : vector<32x256xi32>
    %c128_i32 = arith.constant 128 : i32
    %c0_i32 = arith.constant 0 : i32
    %9 = arith.cmpi eq, %c128_i32, %c0_i32 : i32
    %c1_i32 = arith.constant 1 : i32
    %10 = arith.select %9, %c1_i32, %c128_i32 : i32
    %11 = vector.broadcast %10 : i32 to vector<32x256xi32>
    %12 = arith.remsi %8, %11 : vector<32x256xi32>
    %c0_i32_9 = arith.constant 0 : i32
    %13 = vector.broadcast %c0_i32_9 : i32 to vector<32x256xi32>
    %14 = arith.cmpi ne, %12, %13 : vector<32x256xi32>
    %c0_i32_10 = arith.constant 0 : i32
    %15 = vector.broadcast %c0_i32_10 : i32 to vector<32x256xi32>
    %16 = arith.cmpi slt, %12, %15 : vector<32x256xi32>
    %c0_i32_11 = arith.constant 0 : i32
    %17 = arith.cmpi slt, %10, %c0_i32_11 : i32
    %18 = vector.broadcast %17 : i1 to vector<32x256xi1>
    %19 = vector.broadcast %18 : vector<32x256xi1> to vector<32x256xi1>
    %20 = arith.xori %16, %19 : vector<32x256xi1>
    %21 = arith.andi %20, %14 : vector<32x256xi1>
    %22 = vector.broadcast %10 : i32 to vector<32x256xi32>
    %23 = arith.addi %12, %22 : vector<32x256xi32>
    %24 = arith.select %21, %23, %12 : vector<32x256xi1>, vector<32x256xi32>
    %c64_i32 = arith.constant 64 : i32
    %25 = vector.broadcast %c64_i32 : i32 to vector<32x256xi32>
    %26 = arith.cmpi slt, %24, %25 : vector<32x256xi32>
    %27 = arith.select %26, %5, %7 : vector<32x256xi1>, vector<32x256xf32>
    %c0_12 = arith.constant 0 : index
    %c0_13 = arith.constant 0 : index
    %28 = vector.load %arg5[%c0_12, %c0_13] : memref<32x256xbf16, #tpu.memory_space<vmem>>, vector<32x256xbf16>
    %29 = arith.extf %28 : vector<32x256xbf16> to vector<32x256xf32>
    %30 = arith.addf %27, %29 : vector<32x256xf32>
    %c0_14 = arith.constant 0 : index
    %c0_15 = arith.constant 0 : index
    %31 = vector.load %arg6[%c0_14, %c0_15] : memref<10x32xf32, #tpu.memory_space<vmem>>, vector<10x32xf32>
    %cst_16 = arith.constant dense<0.000000e+00> : vector<10x256xf32>
    %32 = tpu.matmul %31, %30, %cst_16 {dimension_numbers = #tpu.dot_dimension_numbers<[1], [0], [0], [1], [0, 0, 1, 1], [], []>} : vector<10x32xf32>, vector<32x256xf32>, vector<10x256xf32> -> vector<10x256xf32>
    %33 = vector.extract_strided_slice %32 {offsets = [0, 0], sizes = [10, 128], strides = [1, 1]} : vector<10x256xf32> to vector<10x128xf32>
    %cst_17 = arith.constant dense<0xFF800000> : vector<10xf32>
    %34 = vector.multi_reduction <maximumf>, %33, %cst_17 [1] : vector<10x128xf32> to vector<10xf32>
    %35 = vector.shape_cast %34 : vector<10xf32> to vector<10x1xf32>
    %36 = vector.broadcast %35 : vector<10x1xf32> to vector<10x128xf32>
    %37 = arith.subf %33, %36 : vector<10x128xf32>
    %38 = math.exp %37 : vector<10x128xf32>
    %cst_18 = arith.constant dense<0.000000e+00> : vector<10xf32>
    %39 = vector.multi_reduction <add>, %38, %cst_18 [1] : vector<10x128xf32> to vector<10xf32>
    %40 = vector.shape_cast %39 : vector<10xf32> to vector<10x1xf32>
    %41 = vector.broadcast %40 : vector<10x1xf32> to vector<10x128xf32>
    %42 = arith.divf %38, %41 : vector<10x128xf32>
    %43 = vector.extract_strided_slice %30 {offsets = [0, 0], sizes = [32, 128], strides = [1, 1]} : vector<32x256xf32> to vector<32x128xf32>
    %cst_19 = arith.constant dense<0.000000e+00> : vector<10x32xf32>
    %44 = tpu.matmul %42, %43, %cst_19 {dimension_numbers = #tpu.dot_dimension_numbers<[1], [1], [0], [0], [0, 0, 1, 0], [], []>} : vector<10x128xf32>, vector<32x128xf32>, vector<10x32xf32> -> vector<10x32xf32>
    %45 = vector.extract_strided_slice %32 {offsets = [0, 128], sizes = [10, 128], strides = [1, 1]} : vector<10x256xf32> to vector<10x128xf32>
    %cst_20 = arith.constant dense<0xFF800000> : vector<10xf32>
    %46 = vector.multi_reduction <maximumf>, %45, %cst_20 [1] : vector<10x128xf32> to vector<10xf32>
    %47 = vector.shape_cast %46 : vector<10xf32> to vector<10x1xf32>
    %48 = vector.broadcast %47 : vector<10x1xf32> to vector<10x128xf32>
    %49 = arith.subf %45, %48 : vector<10x128xf32>
    %50 = math.exp %49 : vector<10x128xf32>
    %cst_21 = arith.constant dense<0.000000e+00> : vector<10xf32>
    %51 = vector.multi_reduction <add>, %50, %cst_21 [1] : vector<10x128xf32> to vector<10xf32>
    %52 = vector.shape_cast %51 : vector<10xf32> to vector<10x1xf32>
    %53 = vector.broadcast %52 : vector<10x1xf32> to vector<10x128xf32>
    %54 = arith.divf %50, %53 : vector<10x128xf32>
    %55 = vector.extract_strided_slice %30 {offsets = [0, 128], sizes = [32, 128], strides = [1, 1]} : vector<32x256xf32> to vector<32x128xf32>
    %cst_22 = arith.constant dense<0.000000e+00> : vector<10x32xf32>
    %56 = tpu.matmul %54, %55, %cst_22 {dimension_numbers = #tpu.dot_dimension_numbers<[1], [1], [0], [0], [0, 0, 1, 0], [], []>} : vector<10x128xf32>, vector<32x128xf32>, vector<10x32xf32> -> vector<10x32xf32>
    %57 = tpu.concatenate %44, %56 in 0 : vector<10x32xf32>, vector<10x32xf32> -> vector<20x32xf32>
    %c0_23 = arith.constant 0 : index
    %c0_24 = arith.constant 0 : index
    %58 = vector.load %arg7[%c0_23, %c0_24] : memref<32x4xf32, #tpu.memory_space<vmem>>, vector<32x4xf32>
    %cst_25 = arith.constant dense<0.000000e+00> : vector<20x4xf32>
    %59 = tpu.matmul %57, %58, %cst_25 {dimension_numbers = #tpu.dot_dimension_numbers<[1], [0], [0], [1], [0, 0, 1, 1], [], []>} : vector<20x32xf32>, vector<32x4xf32>, vector<20x4xf32> -> vector<20x4xf32>
    %c0_26 = arith.constant 0 : index
    %c0_27 = arith.constant 0 : index
    %60 = vector.load %arg8[%c0_26, %c0_27] : memref<1x4xf32, #tpu.memory_space<vmem>>, vector<1x4xf32>
    %61 = vector.broadcast %60 : vector<1x4xf32> to vector<20x4xf32>
    %62 = arith.addf %59, %61 : vector<20x4xf32>
    %63 = tpu.iota {dimensions = array<i32: 1>} : vector<20x4xi32>
    %c2_i32 = arith.constant 2 : i32
    %64 = vector.broadcast %c2_i32 : i32 to vector<20x4xi32>
    %65 = arith.cmpi slt, %63, %64 : vector<20x4xi32>
    %66 = arith.negf %62 : vector<20x4xf32>
    %67 = math.exp %66 : vector<20x4xf32>
    %cst_28 = arith.constant 1.000000e+00 : f32
    %68 = vector.broadcast %cst_28 : f32 to vector<20x4xf32>
    %69 = arith.addf %68, %67 : vector<20x4xf32>
    %70 = arith.divf %68, %69 : vector<20x4xf32>
    %71 = arith.select %65, %62, %70 : vector<20x4xi1>, vector<20x4xf32>
    %c0_29 = arith.constant 0 : index
    %c0_30 = arith.constant 0 : index
    %72 = vector.load %arg9[%c0_29, %c0_30] : memref<20x4xf32, #tpu.memory_space<vmem>>, vector<20x4xf32>
    tpu.vector_store %arg9[%c0_29, %c0_30], %71 {strides = array<i32>} : memref<20x4xf32, #tpu.memory_space<vmem>>, vector<20x4xf32>,
    return
  }
  func.func @transform_0(%arg0: i32) -> (i32, i32) {
    %c0_i32 = arith.constant 0 : i32
    %c0_i32_0 = arith.constant 0 : i32
    %c0_i32_1 = arith.constant 0 : i32
    return %c0_i32, %c0_i32_0 : i32, i32
  }
  func.func @transform_1(%arg0: i32) -> (i32, i32) {
    %c0_i32 = arith.constant 0 : i32
    %c0_i32_0 = arith.constant 0 : i32
    %c0_i32_1 = arith.constant 0 : i32
    return %c0_i32, %c0_i32_0 : i32, i32
  }
  func.func @transform_2(%arg0: i32) -> (i32, i32) {
    %c0_i32 = arith.constant 0 : i32
    %c0_i32_0 = arith.constant 0 : i32
    %c0_i32_1 = arith.constant 0 : i32
    return %c0_i32, %c0_i32_0 : i32, i32
  }
  func.func @transform_3(%arg0: i32) -> (i32, i32) {
    %c0_i32 = arith.constant 0 : i32
    %c0_i32_0 = arith.constant 0 : i32
    %c0_i32_1 = arith.constant 0 : i32
    return %c0_i32, %c0_i32_0 : i32, i32
  }
  func.func @transform_4(%arg0: i32) -> (i32, i32) {
    %c0_i32 = arith.constant 0 : i32
    %c0_i32_0 = arith.constant 0 : i32
    %c0_i32_1 = arith.constant 0 : i32
    return %c0_i32, %c0_i32_0 : i32, i32
  }
  func.func @transform_5(%arg0: i32) -> (i32, i32) {
    %c0_i32 = arith.constant 0 : i32
    %c0_i32_0 = arith.constant 0 : i32
    %c0_i32_1 = arith.constant 0 : i32
    return %c0_i32, %c0_i32_0 : i32, i32
  }
  func.func @transform_6(%arg0: i32) -> (i32, i32) {
    %c0_i32 = arith.constant 0 : i32
    %c0_i32_0 = arith.constant 0 : i32
    %c0_i32_1 = arith.constant 0 : i32
    return %c0_i32, %c0_i32_0 : i32, i32
  }
  func.func @transform_7(%arg0: i32) -> (i32, i32) {
    %c0_i32 = arith.constant 0 : i32
    %c0_i32_0 = arith.constant 0 : i32
    %c0_i32_1 = arith.constant 0 : i32
    return %c0_i32, %c0_i32_0 : i32, i32
  }
  func.func @transform_8(%arg0: i32) -> (i32, i32) {
    %c0_i32 = arith.constant 0 : i32
    %c0_i32_0 = arith.constant 0 : i32
    %c0_i32_1 = arith.constant 0 : i32
    return %c0_i32, %c0_i32_0 : i32, i32
  }
}

</mosaic_0001>

<bundles_post_ra>
// kernel: retr_forward.1
= control target key start
LH: loop header
LB: loop body
LE: loop exit
PB: predicated region body
PF: predicated region fallthrough
CT: control target
= control target key end

     0   :  { %vm237_vm0 = vcmask 1041408   ;;  %vm224_vm1 = vcmask 556032   ;;  %vm382_vm2 = vcmask 523264   ;;  %vm544_vm4 = vcmask 261120   ;;  %s1465_s0 = inlined_call_operand.vmem [shape: bf16[196,256], index: 0, kind: input, shape index: {}]   ;;  %s1466_s1 = inlined_call_operand.vmem [shape: bf16[64,196], index: 1, kind: input, shape index: {}]   ;;  %s1467_s2 = inlined_call_operand.vmem [shape: bf16[32,64], index: 2, kind: input, shape index: {}]   ;;  %s1468_s3 = inlined_call_operand.vmem [shape: bf16[32,64], index: 3, kind: input, shape index: {}]   ;;  %s1469_s4 = inlined_call_operand.vmem [shape: bf16[32,256], index: 4, kind: input, shape index: {}]   ;;  %s1470_s5 = inlined_call_operand.vmem [shape: f32[10,32], index: 5, kind: input, shape index: {}]   ;;  %s1471_s6 = inlined_call_operand.vmem [shape: f32[32,4], index: 6, kind: input, shape index: {}]   ;;  %s1472_s7 = inlined_call_operand.vmem [shape: f32[1,4], index: 7, kind: input, shape index: {}]   ;;  %s1473_s8 = inlined_call_operand.vmem [shape: f32[20,4], index: 8, kind: output, shape index: {}]  }
   0x1   :  { %v944_v0 = vld [vmem:[%s1465_s0 + $0x70] sm:$0xf]  ;;  %v1047_v1 = vld [vmem:[%s1465_s0 + $0x74] sm:$0xf0]  ;;  %v1046_v2 = vld [vmem:[%s1465_s0 + $0x74] sm:$0xf] }
   0x2   :  { %v945_v3 = vor.u32 %v1047_v1, %v944_v0  ;;  %v946_v4 = vld [vmem:[%s1465_s0 + $0x78] sm:$0xf0]  ;;  %v936_v5 = vld [vmem:[%s1465_s0 + $0x60] sm:$0xf]  ;;  %v1045_v6 = vld [vmem:[%s1465_s0 + $0x64] sm:$0xf0] }
   0x3   :  { %v949_v7 = vor.u32 %v1046_v2, %v946_v4  ;;  %v62_v8 = vld [vmem:[%s1465_s0 + $0xc0] sm:$0x33]  ;;  %v938_v10 = vld [vmem:[%s1465_s0 + $0x68] sm:$0xf0]  ;;  %v937_v11 = vor.u32 %v1045_v6, %v936_v5  ;;  %v928_v15 = vld [vmem:[%s1465_s0 + $0x50] sm:$0xf] }
   0x4   :  { %v1044_v9 = vld [vmem:[%s1465_s0 + $0x64] sm:$0xf]  ;;  %244 = vmatpush.bf16.msra.mxu0 %v945_v3  ;;  %v172_v12 = vunpack.c.l.b16 %v62_v8  ;;  %v173_v13 = vunpack.c.h.b16 %v62_v8  ;;  %v1043_v16 = vld [vmem:[%s1465_s0 + $0x54] sm:$0xf0]  ;;  %v976_v17 = vld [vmem:[%s1465_s0 + $0xb0] sm:$0xf] }
   0x5   :  { %302 = vmatpush.bf16.msra.mxu2 %v949_v7  ;;  %v941_v14 = vor.u32 %v1044_v9, %v938_v10  ;;  %v1055_v19 = vld [vmem:[%s1465_s0 + $0xb4] sm:$0xf0]  ;;  %v1042_v20 = vld [vmem:[%s1465_s0 + $0x54] sm:$0xf]  ;;  %v930_v21 = vld [vmem:[%s1465_s0 + $0x58] sm:$0xf0]  ;;  %v929_v24 = vor.u32 %v1043_v16, %v928_v15 }
   0x6   :  { %v198_v18 = vpack.c.b16 %v172_v12, %v172_v12  ;;  %v199_v22 = vpack.c.b16 %v173_v13, %v173_v13  ;;  %v920_v25 = vld [vmem:[%s1465_s0 + $0x40] sm:$0xf]  ;;  %v1041_v26 = vld [vmem:[%s1465_s0 + $0x44] sm:$0xf0]  ;;  %v977_v28 = vor.u32 %v1055_v19, %v976_v17  ;;  %v933_v29 = vor.u32 %v1042_v20, %v930_v21  ;;  %v1040_v32 = vld [vmem:[%s1465_s0 + $0x44] sm:$0xf] }
   0x7   :  { %v968_v30 = vld [vmem:[%s1465_s0 + $0xa0] sm:$0xf]  ;;  %v1053_v31 = vld [vmem:[%s1465_s0 + $0xa4] sm:$0xf0]  ;;  %v922_v33 = vld [vmem:[%s1465_s0 + $0x48] sm:$0xf0]  ;;  %v921_v37 = vor.u32 %v1041_v26, %v920_v25 }
   0x8   :  { %245 = vmatpush.bf16.msra.mxu0 %v937_v11  ;;  %v239_v23 = vsel %vm237_vm0, %v198_v18, 0  ;;  %v242_v27 = vsel %vm237_vm0, %v199_v22, 0  ;;  %v1054_v34 = vld [vmem:[%s1465_s0 + $0xb4] sm:$0xf]  ;;  %v978_v35 = vld [vmem:[%s1465_s0 + $0xb8] sm:$0xf0]  ;;  %v969_v40 = vor.u32 %v1053_v31, %v968_v30  ;;  %v925_v41 = vor.u32 %v1040_v32, %v922_v33 }
   0x9   :  { %276 = vmatpush.bf16.msra.mxu1 %v239_v23  ;;  %303 = vmatpush.bf16.msra.mxu2 %v941_v14  ;;  %v981_v36 = vor.u32 %v1054_v34, %v978_v35  ;;  %v912_v38 = vld [vmem:[%s1465_s0 + $0x30] sm:$0xf]  ;;  %v1039_v39 = vld [vmem:[%s1465_s0 + $0x34] sm:$0xf0]  ;;  %v1052_v43 = vld [vmem:[%s1465_s0 + $0xa4] sm:$0xf] }
   0xa   :  { %334 = vmatpush.bf16.msra.mxu3 %v242_v27  ;;  %v960_v42 = vld [vmem:[%s1465_s0 + $0x90] sm:$0xf]  ;;  %v970_v44 = vld [vmem:[%s1465_s0 + $0xa8] sm:$0xf0]  ;;  %v1051_v45 = vld [vmem:[%s1465_s0 + $0x94] sm:$0xf0]  ;;  %v913_v50 = vor.u32 %v1039_v39, %v912_v38 }
   0xb   :  { %v1038_v46 = vld [vmem:[%s1465_s0 + $0x34] sm:$0xf]  ;;  %v914_v47 = vld [vmem:[%s1465_s0 + $0x38] sm:$0xf0]  ;;  %v973_v48 = vor.u32 %v1052_v43, %v970_v44  ;;  %v961_v52 = vor.u32 %v1051_v45, %v960_v42  ;;  %v904_v54 = vld [vmem:[%s1465_s0 + $0x20] sm:$0xf] }
   0xc   :  { %246 = vmatpush.bf16.msra.mxu0 %v929_v24  ;;  %v1050_v49 = vld [vmem:[%s1465_s0 + $0x94] sm:$0xf]  ;;  %v962_v51 = vld [vmem:[%s1465_s0 + $0x98] sm:$0xf0]  ;;  %v917_v53 = vor.u32 %v1038_v46, %v914_v47  ;;  %v1037_v55 = vld [vmem:[%s1465_s0 + $0x24] sm:$0xf0] }
   0xd   :  { %277 = vmatpush.bf16.msra.mxu1 %v977_v28  ;;  %304 = vmatpush.bf16.msra.mxu2 %v933_v29  ;;  %v952_v56 = vld [vmem:[%s1465_s0 + $0x80] sm:$0xf]  ;;  %v1049_v57 = vld [vmem:[%s1465_s0 + $0x84] sm:$0xf0]  ;;  %v1036_v58 = vld [vmem:[%s1465_s0 + $0x24] sm:$0xf]  ;;  %v965_v60 = vor.u32 %v1050_v49, %v962_v51  ;;  %v905_v63 = vor.u32 %v1037_v55, %v904_v54 }
   0xe   :  { %335 = vmatpush.bf16.msra.mxu3 %v981_v36  ;;  %v906_v59 = vld [vmem:[%s1465_s0 + $0x28] sm:$0xf0]  ;;  %v1048_v61 = vld [vmem:[%s1465_s0 + $0x84] sm:$0xf]  ;;  %v953_v1 = vor.u32 %v1049_v57, %v952_v56  ;;  %v896_v4 = vld [vmem:[%s1465_s0 + $0x10] sm:$0xf] }
   0xf   :  { %v954_v62 = vld [vmem:[%s1465_s0 + $0x88] sm:$0xf0]  ;;  %v1024_v0 = vld [vmem:[%s1466_s1 + $0x4] sm:$0xf]  ;;  %v909_v2 = vor.u32 %v1036_v58, %v906_v59  ;;  %v1035_v5 = vld [vmem:[%s1465_s0 + $0x14] sm:$0xf0] }
  0x10   :  { %247 = vmatpush.bf16.msra.mxu0 %v921_v37  ;;  %v858_v3 = vld [vmem:[%s1466_s1 + $0x8] sm:$0xf0]  ;;  %v1034_v6 = vld [vmem:[%s1465_s0 + $0x14] sm:$0xf]  ;;  %v898_v7 = vld [vmem:[%s1465_s0 + $0x18] sm:$0xf0]  ;;  %v957_v8 = vor.u32 %v1048_v61, %v954_v62  ;;  %v897_v10 = vor.u32 %v1035_v5, %v896_v4 }
  0x11   :  { %278 = vmatpush.bf16.msra.mxu1 %v969_v40  ;;  %305 = vmatpush.bf16.msra.mxu2 %v925_v41  ;;  %v861_v9 = vor.u32 %v1024_v0, %v858_v3  ;;  %v901_v11 = vor.u32 %v1034_v6, %v898_v7  ;;  %v888_v12 = vld [vmem:[%s1465_s0] sm:$0xf]  ;;  %v1033_v13 = vld [vmem:[%s1465_s0 + $0x4] sm:$0xf0]  ;;  %v1032_v14 = vld [vmem:[%s1465_s0 + $0x4] sm:$0xf] }
  0x12   :  { %336 = vmatpush.bf16.msra.mxu3 %v973_v48  ;;  %v890_v15 = vld [vmem:[%s1465_s0 + $0x8] sm:$0xf0]  ;;  %v889_v16 = vor.u32 %v1033_v13, %v888_v12  ;;  %v856_v17 = vld [vmem:[%s1466_s1] sm:$0xf]  ;;  %v1025_v18 = vld [vmem:[%s1466_s1 + $0x4] sm:$0xf0] }
  0x13   :  { %v893_v19 = vor.u32 %v1032_v14, %v890_v15  ;;  %v857_v20 = vor.u32 %v1025_v18, %v856_v17  ;;  %v1026_v21 = vld [vmem:[%s1466_s1 + $0x14] sm:$0xf]  ;;  %v866_v22 = vld [vmem:[%s1466_s1 + $0x18] sm:$0xf0]  ;;  %v864_v24 = vld [vmem:[%s1466_s1 + $0x10] sm:$0xf] }
  0x14   :  { %248 = vmatpush.bf16.msra.mxu0 %v913_v50  ;;  %v869_v23 = vor.u32 %v1026_v21, %v866_v22  ;;  %v1027_v25 = vld [vmem:[%s1466_s1 + $0x14] sm:$0xf0]  ;;  %v1028_v27 = vld [vmem:[%s1466_s1 + $0x24] sm:$0xf]  ;;  %v874_v28 = vld [vmem:[%s1466_s1 + $0x28] sm:$0xf0] }
  0x15   :  { %279 = vmatpush.bf16.msra.mxu1 %v961_v52  ;;  %306 = vmatpush.bf16.msra.mxu2 %v917_v53  ;;  %v865_v26 = vor.u32 %v1027_v25, %v864_v24  ;;  %v877_v29 = vor.u32 %v1028_v27, %v874_v28  ;;  %v872_v30 = vld [vmem:[%s1466_s1 + $0x20] sm:$0xf]  ;;  %v1029_v31 = vld [vmem:[%s1466_s1 + $0x24] sm:$0xf0]  ;;  %v1030_v33 = vld [vmem:[%s1466_s1 + $0x34] sm:$0xf] }
  0x16   :  { %337 = vmatpush.bf16.msra.mxu3 %v965_v60  ;;  %v873_v32 = vor.u32 %v1029_v31, %v872_v30  ;;  %v882_v34 = vld [vmem:[%s1466_s1 + $0x38] sm:$0xf0]  ;;  %v880_v36 = vld [vmem:[%s1466_s1 + $0x30] sm:$0xf]  ;;  %v1031_v37 = vld [vmem:[%s1466_s1 + $0x34] sm:$0xf0] }
  0x17   :  { %v885_v35 = vor.u32 %v1030_v33, %v882_v34  ;;  %v881_v38 = vor.u32 %v1031_v37, %v880_v36  ;;  %v1057_v28 = vld [vmem:[%s1467_s2 + $0x8] sm:$0xff]  ;;  %v1056_v30 = vld [vmem:[%s1467_s2] sm:$0xff] }
  0x18   :  { %249 = vmatpush.bf16.msra.mxu0 %v905_v63  ;;  %v1059_v34 = vld [vmem:[%s1468_s3 + $0x8] sm:$0xff] }
  0x19   :  { %280 = vmatpush.bf16.msra.mxu1 %v953_v1  ;;  %307 = vmatpush.bf16.msra.mxu2 %v909_v2 }
  0x1a   :  { %338 = vmatpush.bf16.msra.mxu3 %v957_v8 }
  0x1c   :  { %982 = vmatmul.msk.bf16.vlgmr.msra.gmra.mxu1 %vm224_vm1, %v861_v9  ;;  %250 = vmatpush.bf16.msra.mxu0 %v897_v10 }
  0x1d   :  { %308 = vmatpush.bf16.msra.mxu2 %v901_v11  ;;  %986 = vmatmul.msk.bf16.vlgmr.msra.gmra.mxu3 %vm224_vm1, %v861_v9 }
  0x20   :  { %251 = vmatpush.bf16.msra.mxu0 %v889_v16 }
  0x21   :  { %309 = vmatpush.bf16.msra.mxu2 %v893_v19 }
  0x23   :  { %252 = vmatmul.bf16.vlgmr.msra.gmra.mxu0 %v857_v20 }
  0x24   :  { %310 = vmatmul.bf16.vlgmr.msra.gmra.mxu2 %v857_v20 }
  0x2c   :  { %983 = vmatmul.msk.bf16.gmra.mxu1 %vm224_vm1, %v869_v23 }
  0x2d   :  { %987 = vmatmul.msk.bf16.gmra.mxu3 %vm224_vm1, %v869_v23 }
  0x33   :  { %257 = vmatmul.bf16.gmra.mxu0 %v865_v26 }
  0x34   :  { %315 = vmatmul.bf16.gmra.mxu2 %v865_v26 }
  0x3c   :  { %984 = vmatmul.msk.bf16.gmra.mxu1 %vm224_vm1, %v877_v29 }
  0x3d   :  { %988 = vmatmul.msk.bf16.gmra.mxu3 %vm224_vm1, %v877_v29  ;;  %v1058_v29 = vld [vmem:[%s1468_s3] sm:$0xff] }
  0x43   :  { %262 = vmatmul.bf16.gmra.mxu0 %v873_v32 }
  0x44   :  { %320 = vmatmul.bf16.gmra.mxu2 %v873_v32 }
  0x4c   :  { %985 = vmatmul.msk.bf16.gmra.mxu1 %vm224_vm1, %v885_v35 }
  0x4d   :  { %989 = vmatmul.msk.bf16.gmra.mxu3 %vm224_vm1, %v885_v35 }
  0x53   :  { %267 = vmatmul.bf16.gmra.mxu0 %v881_v38 }
  0x54   :  { %325 = vmatmul.bf16.gmra.mxu2 %v881_v38 }
  0x99   :  { %v282_v39 = vpop.f32.mrf.mxu1 }
  0xa0   :  { %v253_v40 = vpop.f32.mrf.mxu0  ;;  %v340_v41 = vpop.f32.mrf.mxu3 }
  0xa1   :  { %v283_v42 = vadd.f32 %v282_v39, %v253_v40  ;;  %v284_v43 = vpop.f32.mrf.mxu1  ;;  %v485_v39 = vlaneseq }
  0xa7   :  { %v311_v44 = vpop.f32.mrf.mxu2 }
  0xa8   :  { %v1343_v45 = vadd.f32 %v340_v41, %v311_v44  ;;  %v255_v46 = vpop.f32.mrf.mxu0  ;;  %v1345_v47 = vpop.f32.mrf.mxu3  ;;  %v525_v44 = vld [vmem:[%s1469_s4 + $0x18] sm:$0xff] }
  0xa9   :  { %v287_v48 = vpop.f32.mrf.mxu1  ;;  %v285_v22 = vadd.f32 %v284_v43, %v255_v46  ;;  %v1369_v43 = vand.u32 127, %v485_v39 }
  0xab   :  { %v360_v27 = vpack.c.bf16 %v285_v22, %v283_v42  ;;  %vm512_vm3 = vcmp.lt.s32.totalorder %v1369_v43, 64 }
  0xaf   :  { %v313_v49 = vpop.f32.mrf.mxu2 }
  0xb0   :  { %v258_v50 = vpop.f32.mrf.mxu0  ;;  %v345_v51 = vpop.f32.mrf.mxu3  ;;  %v343_v31 = vadd.f32 %v1345_v47, %v313_v49  ;;  %v532_v47 = vunpack.c.l.bf16 %v525_v44 }
  0xb1   :  { %v289_v52 = vpop.f32.mrf.mxu1  ;;  %v288_v18 = vadd.f32 %v287_v48, %v258_v50  ;;  %v523_v48 = vld [vmem:[%s1469_s4 + $0x8] sm:$0xff] }
  0xb2   :  { %v361_v33 = vpack.c.bf16 %v343_v31, %v1343_v45  ;;  %v524_v45 = vld [vmem:[%s1469_s4 + $0x10] sm:$0xff] }
  0xb3   :  { %v530_v49 = vunpack.c.l.bf16 %v524_v45 }
  0xb7   :  { %v316_v53 = vpop.f32.mrf.mxu2 }
  0xb8   :  { %v260_v54 = vpop.f32.mrf.mxu0  ;;  %v347_v55 = vpop.f32.mrf.mxu3  ;;  %v346_v24 = vadd.f32 %v345_v51, %v316_v53  ;;  %v522_v53 = vld [vmem:[%s1469_s4] sm:$0xff] }
  0xb9   :  { %v292_v56 = vpop.f32.mrf.mxu1  ;;  %v290_v14 = vadd.f32 %v289_v52, %v260_v54 }
  0xbb   :  { %v362_v23 = vpack.c.bf16 %v290_v14, %v288_v18  ;;  %v529_v14 = vunpack.c.h.bf16 %v523_v48 }
  0xbf   :  { %v318_v57 = vpop.f32.mrf.mxu2 }
  0xc0   :  { %v263_v58 = vpop.f32.mrf.mxu0  ;;  %v350_v59 = vpop.f32.mrf.mxu3  ;;  %v348_v25 = vadd.f32 %v347_v55, %v318_v57  ;;  %v528_v57 = vunpack.c.l.bf16 %v523_v48 }
  0xc1   :  { %v294_v60 = vpop.f32.mrf.mxu1  ;;  %v293_v11 = vadd.f32 %v292_v56, %v263_v58 }
  0xc2   :  { %v363_v32 = vpack.c.bf16 %v348_v25, %v346_v24 }
  0xc7   :  { %v321_v61 = vpop.f32.mrf.mxu2 }
  0xc8   :  { %v265_v62 = vpop.f32.mrf.mxu0  ;;  %v352_v63 = vpop.f32.mrf.mxu3  ;;  %v351_v19 = vadd.f32 %v350_v59, %v321_v61 }
  0xc9   :  { %v297_v0 = vpop.f32.mrf.mxu1  ;;  %v295_v9 = vadd.f32 %v294_v60, %v265_v62  ;;  %v526_v60 = vunpack.c.l.bf16 %v522_v53 }
  0xcb   :  { %v364_v15 = vpack.c.bf16 %v295_v9, %v293_v11  ;;  %v531_v9 = vunpack.c.h.bf16 %v524_v45 }
  0xcf   :  { %v323_v1 = vpop.f32.mrf.mxu2 }
  0xd0   :  { %v268_v2 = vpop.f32.mrf.mxu0  ;;  %v355_v3 = vpop.f32.mrf.mxu3  ;;  %v353_v20 = vadd.f32 %v352_v63, %v323_v1  ;;  %v542_v1 = vld [vmem:[%s1470_s5] sm:$0xff] }
  0xd1   :  { %v299_v5 = vpop.f32.mrf.mxu1  ;;  %v298_v7 = vadd.f32 %v297_v0, %v268_v2 }
  0xd2   :  { %v365_v26 = vpack.c.bf16 %v353_v20, %v351_v19 }
  0xd7   :  { %v326_v4 = vpop.f32.mrf.mxu2 }
  0xd8   :  { %v270_v6 = vpop.f32.mrf.mxu0  ;;  %v357_v12 = vpop.f32.mrf.mxu3  ;;  %v356_v13 = vadd.f32 %v355_v3, %v326_v4  ;;  %v487_v3 = vadd.s32 128, %v1369_v43 }
  0xd9   :  { %v300_v8 = vadd.f32 %v299_v5, %v270_v6  ;;  %v543_v5 = vld [vmem:[%s1470_s5 + $0x8] sm:$0x3] }
  0xda   :  { %v499_v6 = vand.u32 127, %v487_v3 }
  0xdb   :  { %v366_v10 = vpack.c.bf16 %v300_v8, %v298_v7  ;;  %v533_v7 = vunpack.c.h.bf16 %v525_v44 }
  0xdc   :  { %vm1401_vm5 = vcmp.lt.s32.totalorder %v499_v6, 64 }
  0xdd   :  { %393 = vmatpush.bf16.msrb.mxu1 %v366_v10  ;;  %1060 = vmatpush.bf16.msrb.mxu3 %v366_v10 }
  0xde   :  { %451 = vmatpush.bf16.msrb.mxu0 %v366_v10 }
  0xdf   :  { %v328_v16 = vpop.f32.mrf.mxu2 }
  0xe0   :  { %v358_v17 = vadd.f32 %v357_v12, %v328_v16 }
  0xe1   :  { %394 = vmatpush.bf16.msrb.mxu1 %v364_v15  ;;  %1061 = vmatpush.bf16.msrb.mxu3 %v364_v15 }
  0xe2   :  { %452 = vmatpush.bf16.msrb.mxu0 %v364_v15  ;;  %v367_v21 = vpack.c.bf16 %v358_v17, %v356_v13  ;;  %v527_v17 = vunpack.c.h.bf16 %v522_v53 }
  0xe4   :  { %470 = vmatpush.bf16.msrb.mxu2 %v367_v21 }
  0xe5   :  { %395 = vmatpush.bf16.msrb.mxu1 %v362_v23  ;;  %1062 = vmatpush.bf16.msrb.mxu3 %v362_v23 }
  0xe6   :  { %453 = vmatpush.bf16.msrb.mxu0 %v362_v23 }
  0xe8   :  { %471 = vmatpush.bf16.msrb.mxu2 %v365_v26 }
  0xe9   :  { %396 = vmatpush.bf16.msrb.mxu1 %v360_v27  ;;  %1063 = vmatpush.bf16.msrb.mxu3 %v360_v27 }
  0xea   :  { %454 = vmatpush.bf16.msrb.mxu0 %v360_v27 }
  0xec   :  { %472 = vmatpush.bf16.msrb.mxu2 %v363_v32  ;;  %999 = vmatmul.msk.bf16.vlgmr.msrb.gmra.mxu3 %vm382_vm2, %v1057_v28 }
  0xed   :  { %412 = vmatpush.bf16.msra.mxu3 %v367_v21  ;;  %1010 = vmatmul.msk.bf16.vlgmr.msrb.gmra.mxu0 %vm382_vm2, %v1058_v29 }
  0xee   :  { %998 = vmatmul.msk.bf16.vlgmr.msrb.gmra.mxu1 %vm382_vm2, %v1056_v30 }
  0xf0   :  { %473 = vmatpush.bf16.msrb.mxu2 %v361_v33 }
  0xf1   :  { %413 = vmatpush.bf16.msra.mxu3 %v365_v26 }
  0xf3   :  { %1012 = vmatmul.msk.bf16.vlgmr.msrb.gmra.mxu2 %vm382_vm2, %v1058_v29 }
  0xf5   :  { %414 = vmatpush.bf16.msra.mxu3 %v363_v32 }
  0xf9   :  { %415 = vmatpush.bf16.msra.mxu3 %v361_v33 }
  0xfc   :  { %1000 = vmatmul.msk.bf16.vlgmr.msra.gmra.mxu3 %vm382_vm2, %v1056_v30 }
  0xfd   :  { %1011 = vmatmul.msk.bf16.gmra.mxu0 %vm382_vm2, %v1059_v34 }
 0x103   :  { %1013 = vmatmul.msk.bf16.gmra.mxu2 %vm382_vm2, %v1059_v34 }
 0x10c   :  { %1001 = vmatmul.msk.bf16.gmra.mxu3 %vm382_vm2, %v1057_v28 }
 0x16a   :  { %v456_v35 = vpop.f32.mrf.mxu0 }
 0x16b   :  { %v398_v40 = vpop.f32.mrf.mxu1 }
 0x16c   :  { %v514_v61 = vsel %vm512_vm3, %v398_v40, %v456_v35 }
 0x16d   :  { %v534_v0 = vadd.f32 %v526_v60, %v514_v61 }
 0x16f   :  { %v403_v36 = vpop.f32.mrf.mxu3 }
 0x172   :  { %v458_v37 = vpop.f32.mrf.mxu0 }
 0x173   :  { %v400_v51 = vpop.f32.mrf.mxu1 }
 0x174   :  { %v516_v58 = vsel %vm512_vm3, %v400_v51, %v458_v37 }
 0x175   :  { %v536_v63 = vadd.f32 %v528_v57, %v516_v58 }
 0x176   :  { %v475_v41 = vpop.f32.mrf.mxu2 }
 0x177   :  { %v405_v38 = vpop.f32.mrf.mxu3 }
 0x17a   :  { %v461_v42 = vpop.f32.mrf.mxu0 }
 0x17b   :  { %v518_v52 = vsel %vm512_vm3, %v403_v36, %v461_v42 }
 0x17c   :  { %v538_v59 = vadd.f32 %v530_v49, %v518_v52 }
 0x17e   :  { %v477_v55 = vpop.f32.mrf.mxu2 }
 0x17f   :  { %v417_v46 = vpop.f32.mrf.mxu3 }
 0x180   :  { %v515_v19 = vsel %vm1401_vm5, %v417_v46, %v475_v41 }
 0x181   :  { %v535_v21 = vadd.f32 %v527_v17, %v515_v19 }
 0x182   :  { %v463_v50 = vpop.f32.mrf.mxu0 }
 0x183   :  { %v520_v54 = vsel %vm512_vm3, %v405_v38, %v463_v50 }
 0x184   :  { %v540_v56 = vadd.f32 %v532_v47, %v520_v54 }
 0x186   :  { %563 = vmatpush.msra.mxu1 %v540_v56  ;;  %655 = vmatpush.xpose.msra.mxu0 %v540_v56  ;;  %v480_v2 = vpop.f32.mrf.mxu2 }
 0x187   :  { %v419_v62 = vpop.f32.mrf.mxu3 }
 0x188   :  { %564 = vmatpush.msra.mxu1 %v538_v59  ;;  %v517_v16 = vsel %vm1401_vm5, %v419_v62, %v477_v55 }
 0x189   :  { %v537_v20 = vadd.f32 %v529_v14, %v517_v16 }
 0x18a   :  { %565 = vmatpush.msra.mxu1 %v536_v63  ;;  %656 = vmatpush.xpose.msra.mxu0 %v538_v59 }
 0x18c   :  { %566 = vmatpush.msra.mxu1 %v534_v0 }
 0x18d   :  { %1014 = vmatmul.msk.f32.vlgmr.msra.gmra.mxu1 %vm544_vm4, %v542_v1 }
 0x18e   :  { %657 = vmatpush.xpose.msra.mxu0 %v536_v63  ;;  %v482_v11 = vpop.f32.mrf.mxu2 }
 0x18f   :  { %v422_v4 = vpop.f32.mrf.mxu3 }
 0x190   :  { %v519_v12 = vsel %vm1401_vm5, %v422_v4, %v480_v2  ;;  %v745_v4 = vld [vmem:[%s1471_s6 + $0x18] sm:$0xff] }
 0x191   :  { %v539_v18 = vadd.f32 %v531_v9, %v519_v12  ;;  %770 = vmatpush.msrb.mxu1 %v745_v4  ;;  %v743_v9 = vld [vmem:[%s1471_s6 + $0x8] sm:$0xff] }
 0x192   :  { %658 = vmatpush.xpose.msra.mxu0 %v534_v0 }
 0x195   :  { %1015 = vmatmul.msk.f32.gmra.mxu1 %vm544_vm4, %v543_v5 }
 0x197   :  { %v424_v10 = vpop.f32.mrf.mxu3 }
 0x198   :  { %v521_v13 = vsel %vm1401_vm5, %v424_v10, %v482_v11 }
 0x199   :  { %v541_v15 = vadd.f32 %v533_v7, %v521_v13 }
 0x19b   :  { %586 = vmatpush.msrb.mxu3 %v541_v15  ;;  %724 = vmatpush.xpose.msra.mxu2 %v541_v15 }
 0x19d   :  { %587 = vmatpush.msrb.mxu3 %v539_v18 }
 0x19f   :  { %588 = vmatpush.msrb.mxu3 %v537_v20  ;;  %725 = vmatpush.xpose.msra.mxu2 %v539_v18 }
 0x1a1   :  { %589 = vmatpush.msrb.mxu3 %v535_v21 }
 0x1a2   :  { %1016 = vmatmul.msk.f32.vlgmr.msrb.gmra.mxu3 %vm544_vm4, %v542_v1 }
 0x1a3   :  { %726 = vmatpush.xpose.msra.mxu2 %v537_v20 }
 0x1a7   :  { %727 = vmatpush.xpose.msra.mxu2 %v535_v21 }
 0x1aa   :  { %1017 = vmatmul.msk.f32.gmra.mxu3 %vm544_vm4, %v543_v5  ;;  %v744_v5 = vld [vmem:[%s1471_s6 + $0x10] sm:$0xff] }
 0x1ab   :  { %771 = vmatpush.msrb.mxu1 %v744_v5 }
 0x1ad   :  { %772 = vmatpush.msrb.mxu1 %v743_v9 }
 0x20a   :  { %v568_v22 = vpop.f32.mrf.mxu1 }
 0x20b   :  { %597 = vmax.xlane.f32.xlu0 %v568_v22 }
 0x212   :  { %v571_v23 = vpop.f32.mrf.mxu1 }
 0x213   :  { %v599_v24 = vsel %vm237_vm0, %v571_v23, -inf }
 0x214   :  { %600 = vmax.xlane.f32.xlu1 %v599_v24 }
 0x225   :  { %v591_v25 = vpop.f32.mrf.mxu3 }
 0x226   :  { %666 = vmax.xlane.f32.xlu0 %v591_v25 }
 0x22d   :  { %v594_v26 = vpop.f32.mrf.mxu3 }
 0x22e   :  { %v668_v27 = vsel %vm237_vm0, %v594_v26, -inf }
 0x22f   :  { %669 = vmax.xlane.f32.xlu1 %v668_v27 }
 0x27e   :  { %v598_v28 = vpop.xlane.xlu0 %597 }
 0x27f   :  { %v602_v29 = vsub.f32 %v568_v22, %v598_v28 }
 0x281   :  { %v604_v30 = vmul.f32 1.442695, %v602_v29 }
 0x283   :  { %1065 = vpow2.f32 %v604_v30 }
 0x287   :  { %v601_v31 = vpop.xlane.xlu1 %600 }
 0x288   :  { %v603_v32 = vsub.f32 %v571_v23, %v601_v31 }
 0x289   :  { %v1066_v33 = vpop.eup %1065 }
 0x28a   :  { %v606_v34 = vmul.f32 1.442695, %v603_v32  ;;  %608 = vadd.xlane.f32.xlu2 %v1066_v33 }
 0x28c   :  { %1067 = vpow2.f32 %v606_v34  ;;  %v742_v34 = vld [vmem:[%s1471_s6] sm:$0xff] }
 0x28d   :  { %773 = vmatpush.msrb.mxu1 %v742_v34 }
 0x292   :  { %v1068_v35 = vpop.eup %1067 }
 0x293   :  { %v610_v36 = vsel %vm237_vm0, %v1068_v35, 0.0 }
 0x294   :  { %611 = vadd.xlane.f32.xlu0 %v610_v36 }
 0x299   :  { %v667_v37 = vpop.xlane.xlu0 %666 }
 0x29a   :  { %v671_v38 = vsub.f32 %v591_v25, %v667_v37 }
 0x29c   :  { %v673_v39 = vmul.f32 1.442695, %v671_v38 }
 0x29e   :  { %1069 = vpow2.f32 %v673_v39 }
 0x2a2   :  { %v670_v40 = vpop.xlane.xlu1 %669 }
 0x2a3   :  { %v672_v41 = vsub.f32 %v594_v26, %v670_v40 }
 0x2a4   :  { %v1418_v42 = vpop.eup %1069 }
 0x2a5   :  { %v675_v44 = vmul.f32 1.442695, %v672_v41  ;;  %677 = vadd.xlane.f32.xlu2 %v1418_v42 }
 0x2a7   :  { %1071 = vpow2.f32 %v675_v44  ;;  %v1064_v44 = vld [vmem:[%s1472_s7] ss:$0 sm:$0xff] }
 0x2ad   :  { %v1421_v45 = vpop.eup %1071 }
 0x2ae   :  { %v679_v46 = vsel %vm237_vm0, %v1421_v45, 0.0 }
 0x2af   :  { %680 = vadd.xlane.f32.xlu1 %v679_v46 }
 0x2fd   :  { %v609_v47 = vpop.xlane.xlu2 %608 }
 0x2fe   :  { %1073 = vrcp.f32 %v609_v47  ;;  %v624_v52 = vand.u32 2147483648, %v609_v47  ;;  %v622_v54 = vand.u32 2147483647, %v609_v47  ;;  %vm618_vm7 = vweird.f32 %v609_v47 }
 0x300   :  { %v625_v56 = vor.u32 1.1754944e-38, %v624_v52  ;;  %vm623_vm9 = vcmp.eq.f32.partialorder %v622_v54, 8.507059e+37 }
 0x304   :  { %v1074_v48 = vpop.eup %1073 }
 0x305   :  { %v614_v49 = vmul.f32 %v1074_v48, %v609_v47  ;;  %vm619_vm6 = vweird.f32 %v1074_v48 }
 0x306   :  { %vm620_vm8 = vmor %vm618_vm7, %vm619_vm6 }
 0x307   :  { %v615_v50 = vsub.f32 1.0, %v614_v49  ;;  %v612_v51 = vpop.xlane.xlu0 %611 }
 0x308   :  { %1075 = vrcp.f32 %v612_v51  ;;  %v639_v63 = vand.u32 2147483648, %v612_v51  ;;  %v637_v1 = vand.u32 2147483647, %v612_v51  ;;  %vm633_vm11 = vweird.f32 %v612_v51 }
 0x309   :  { %v616_v53 = vmul.f32 %v1074_v48, %v615_v50 }
 0x30a   :  { %v640_v3 = vor.u32 1.1754944e-38, %v639_v63  ;;  %vm638_vm13 = vcmp.eq.f32.partialorder %v637_v1, 8.507059e+37 }
 0x30b   :  { %v617_v55 = vadd.f32 %v1074_v48, %v616_v53 }
 0x30d   :  { %v621_v57 = vsel %vm620_vm8, %v1074_v48, %v617_v55 }
 0x30e   :  { %v1076_v58 = vpop.eup %1075  ;;  %v626_v59 = vsel %vm623_vm9, %v625_v56, %v621_v57 }
 0x30f   :  { %v629_v60 = vmul.f32 %v1076_v58, %v612_v51  ;;  %v627_v61 = vmul.f32 %v1066_v33, %v626_v59  ;;  %vm634_vm10 = vweird.f32 %v1076_v58 }
 0x310   :  { %vm635_vm12 = vmor %vm633_vm11, %vm634_vm10  ;;  %vm845_vm11 = vcmask 31744  }
 0x311   :  { %v630_v62 = vsub.f32 1.0, %v629_v60  ;;  %659 = vmatmul.f32.vlgmr.msra.gmra.mxu0 %v627_v61 }
 0x313   :  { %v631_v0 = vmul.f32 %v1076_v58, %v630_v62 }
 0x315   :  { %v632_v2 = vadd.f32 %v1076_v58, %v631_v0 }
 0x317   :  { %v636_v6 = vsel %vm635_vm12, %v1076_v58, %v632_v2 }
 0x318   :  { %v678_v7 = vpop.xlane.xlu2 %677  ;;  %v641_v8 = vsel %vm638_vm13, %v640_v3, %v636_v6 }
 0x319   :  { %1077 = vrcp.f32 %v678_v7  ;;  %v642_v10 = vmul.f32 %v1068_v35, %v641_v8  ;;  %v693_v15 = vand.u32 2147483648, %v678_v7  ;;  %v691_v17 = vand.u32 2147483647, %v678_v7 }
 0x31a   :  { %vm687_vm15 = vweird.f32 %v678_v7 }
 0x31b   :  { %662 = vmatmul.f32.gmra.mxu0 %v642_v10  ;;  %v694_v19 = vor.u32 1.1754944e-38, %v693_v15  ;;  %vm692_vm2 = vcmp.eq.f32.partialorder %v691_v17, 8.507059e+37 }
 0x31f   :  { %v1078_v11 = vpop.eup %1077 }
 0x320   :  { %v683_v12 = vmul.f32 %v1078_v11, %v678_v7  ;;  %vm688_vm14 = vweird.f32 %v1078_v11 }
 0x321   :  { %vm689_vm1 = vmor %vm687_vm15, %vm688_vm14 }
 0x322   :  { %v684_v13 = vsub.f32 1.0, %v683_v12  ;;  %v681_v14 = vpop.xlane.xlu1 %680 }
 0x323   :  { %1079 = vrcp.f32 %v681_v14  ;;  %v708_v26 = vand.u32 2147483648, %v681_v14  ;;  %v706_v28 = vand.u32 2147483647, %v681_v14  ;;  %vm702_vm5 = vweird.f32 %v681_v14 }
 0x324   :  { %v685_v16 = vmul.f32 %v1078_v11, %v684_v13 }
 0x325   :  { %v709_v30 = vor.u32 1.1754944e-38, %v708_v26  ;;  %vm707_vm7 = vcmp.eq.f32.partialorder %v706_v28, 8.507059e+37 }
 0x326   :  { %v686_v18 = vadd.f32 %v1078_v11, %v685_v16 }
 0x328   :  { %v690_v20 = vsel %vm689_vm1, %v1078_v11, %v686_v18 }
 0x329   :  { %v1080_v21 = vpop.eup %1079  ;;  %v695_v22 = vsel %vm692_vm2, %v694_v19, %v690_v20 }
 0x32a   :  { %v698_v23 = vmul.f32 %v1080_v21, %v681_v14  ;;  %v696_v24 = vmul.f32 %v1418_v42, %v695_v22  ;;  %vm703_vm3 = vweird.f32 %v1080_v21 }
 0x32b   :  { %vm704_vm6 = vmor %vm702_vm5, %vm703_vm3 }
 0x32c   :  { %v699_v25 = vsub.f32 1.0, %v698_v23  ;;  %728 = vmatmul.f32.vlgmr.msra.gmra.mxu2 %v696_v24 }
 0x32e   :  { %v700_v27 = vmul.f32 %v1080_v21, %v699_v25 }
 0x330   :  { %v701_v29 = vadd.f32 %v1080_v21, %v700_v27 }
 0x332   :  { %v705_v31 = vsel %vm704_vm6, %v1080_v21, %v701_v29  ;;  %vm848_vm6 = vcmask 27648  }
 0x333   :  { %v710_v32 = vsel %vm707_vm7, %v709_v30, %v705_v31 }
 0x334   :  { %v711_v33 = vmul.f32 %v1421_v45, %v710_v32 }
 0x336   :  { %731 = vmatmul.f32.gmra.mxu2 %v711_v33 }
 0x38e   :  { %v660_v35 = vpop.f32.mrf.mxu0 }
 0x38f   :  { %1018 = vmatmul.msk.f32.vlgmr.msrb.gmra.mxu1 %vm544_vm4, %v660_v35 }
 0x398   :  { %v663_v38 = vpop.f32.mrf.mxu0 }
 0x3af   :  { %v729_v36 = vpop.f32.mrf.mxu2 }
 0x3b0   :  { %v737_v37 = vrot.slane %v729_v36, 6 }
 0x3b2   :  { %v741_v39 = vsel %vm237_vm0, %v663_v38, %v737_v37 }
 0x3b3   :  { %1019 = vmatmul.msk.f32.gmra.mxu1 %vm544_vm4, %v741_v39 }
 0x3b9   :  { %v732_v40 = vpop.f32.mrf.mxu2 }
 0x3ba   :  { %v738_v41 = vrot.slane %v732_v40, 6 }
 0x3bc   :  { %v739_v42 = vsel %vm237_vm0, %v737_v37, %v738_v41 }
 0x3bd   :  { %1020 = vmatmul.msk.f32.gmra.mxu1 %vm544_vm4, %v739_v42  ;;  %vm784_vm4 = vcmp.lt.s32.totalorder %v1369_v43, 2 }
 0x40c   :  { %v775_v45 = vpop.f32.mrf.mxu1 }
 0x40d   :  { %v776_v46 = vadd.f32 %v1064_v44, %v775_v45 }
 0x40f   :  { %v1021_v47 = vmul.f32 -1.442695, %v776_v46 }
 0x411   :  { %1081 = vpow2.f32 %v1021_v47 }
 0x417   :  { %v1082_v48 = vpop.eup %1081 }
 0x418   :  { %v794_v49 = vadd.f32 1.0, %v1082_v48 }
 0x41a   :  { %1083 = vrcp.f32 %v794_v49  ;;  %v808_v53 = vand.u32 2147483648, %v794_v49  ;;  %v806_v55 = vand.u32 2147483647, %v794_v49  ;;  %vm802_vm0 = vweird.f32 %v794_v49 }
 0x41c   :  { %v809_v57 = vor.u32 1.1754944e-38, %v808_v53  ;;  %vm807_vm10 = vcmp.eq.f32.partialorder %v806_v55, 8.507059e+37 }
 0x420   :  { %v1084_v50 = vpop.eup %1083 }
 0x421   :  { %v798_v51 = vmul.f32 %v1084_v50, %v794_v49  ;;  %vm803_vm8 = vweird.f32 %v1084_v50 }
 0x422   :  { %vm804_vm9 = vmor %vm802_vm0, %vm803_vm8 }
 0x423   :  { %v799_v52 = vsub.f32 1.0, %v798_v51 }
 0x425   :  { %v800_v54 = vmul.f32 %v1084_v50, %v799_v52 }
 0x427   :  { %v801_v56 = vadd.f32 %v1084_v50, %v800_v54 }
 0x429   :  { %v805_v58 = vsel %vm804_vm9, %v1084_v50, %v801_v56 }
 0x42a   :  { %v810_v59 = vsel %vm807_vm10, %v809_v57, %v805_v58 }
 0x42b   :  { %v842_v60 = vsel %vm784_vm4, %v776_v46, %v810_v59 }
 0x42c   :  { %846 = vst.msk [vmem:[%s1473_s8] sm:$0xff] %vm845_vm11, %v842_v60 }
 0x430   :  { %v778_v61 = vpop.f32.mrf.mxu1 }
 0x431   :  { %v779_v62 = vadd.f32 %v1064_v44, %v778_v61 }
 0x433   :  { %v1022_v63 = vmul.f32 -1.442695, %v779_v62 }
 0x435   :  { %1085 = vpow2.f32 %v1022_v63 }
 0x43a   :  { %v781_v0 = vpop.f32.mrf.mxu1 }
 0x43b   :  { %v1086_v1 = vpop.eup %1085  ;;  %v782_v2 = vadd.f32 %v1064_v44, %v781_v0 }
 0x43c   :  { %v795_v3 = vadd.f32 1.0, %v1086_v1 }
 0x43d   :  { %v1023_v4 = vmul.f32 -1.442695, %v782_v2 }
 0x43e   :  { %1087 = vrcp.f32 %v795_v3  ;;  %v823_v10 = vand.u32 2147483648, %v795_v3  ;;  %v821_v12 = vand.u32 2147483647, %v795_v3  ;;  %vm817_vm13 = vweird.f32 %v795_v3 }
 0x43f   :  { %1089 = vpow2.f32 %v1023_v4 }
 0x440   :  { %v824_v14 = vor.u32 1.1754944e-38, %v823_v10  ;;  %vm822_vm15 = vcmp.eq.f32.partialorder %v821_v12, 8.507059e+37 }
 0x444   :  { %v1088_v5 = vpop.eup %1087 }
 0x445   :  { %v1090_v6 = vpop.eup %1089  ;;  %v813_v7 = vmul.f32 %v1088_v5, %v795_v3  ;;  %vm818_vm12 = vweird.f32 %v1088_v5 }
 0x446   :  { %v796_v8 = vadd.f32 1.0, %v1090_v6  ;;  %vm819_vm14 = vmor %vm817_vm13, %vm818_vm12 }
 0x447   :  { %v814_v9 = vsub.f32 1.0, %v813_v7 }
 0x448   :  { %1091 = vrcp.f32 %v796_v8  ;;  %v838_v21 = vand.u32 2147483648, %v796_v8  ;;  %v836_v23 = vand.u32 2147483647, %v796_v8  ;;  %vm832_vm2 = vweird.f32 %v796_v8 }
 0x449   :  { %v815_v11 = vmul.f32 %v1088_v5, %v814_v9 }
 0x44a   :  { %v839_v25 = vor.u32 1.1754944e-38, %v838_v21  ;;  %vm837_vm5 = vcmp.eq.f32.partialorder %v836_v23, 8.507059e+37 }
 0x44b   :  { %v816_v13 = vadd.f32 %v1088_v5, %v815_v11 }
 0x44d   :  { %v820_v15 = vsel %vm819_vm14, %v1088_v5, %v816_v13 }
 0x44e   :  { %v1092_v16 = vpop.eup %1091  ;;  %v825_v17 = vsel %vm822_vm15, %v824_v14, %v820_v15 }
 0x44f   :  { %v843_v18 = vsel %vm784_vm4, %v779_v62, %v825_v17  ;;  %v828_v19 = vmul.f32 %v1092_v16, %v796_v8  ;;  %vm833_vm1 = vweird.f32 %v1092_v16 }
 0x450   :  { %847 = vst.msk [vmem:[%s1473_s8 + $0x8] sm:$0xff] %vm845_vm11, %v843_v18  ;;  %vm834_vm3 = vmor %vm832_vm2, %vm833_vm1 }
 0x451   :  { %v829_v20 = vsub.f32 1.0, %v828_v19 }
 0x453   :  { %v830_v22 = vmul.f32 %v1092_v16, %v829_v20 }
 0x455   :  { %v831_v24 = vadd.f32 %v1092_v16, %v830_v22 }
 0x457   :  { %v835_v26 = vsel %vm834_vm3, %v1092_v16, %v831_v24 }
 0x458   :  { %v840_v27 = vsel %vm837_vm5, %v839_v25, %v835_v26 }
 0x459   :  { %v844_v28 = vsel %vm784_vm4, %v782_v2, %v840_v27 }
 0x45a   :  { %849 = vst.msk [vmem:[%s1473_s8 + $0x10] sm:$0xf] %vm848_vm6, %v844_v28 }

</bundles_post_ra>
